<compile_context>
chip_gen: v5e
topology: v5e:2x2
jax: 0.10.0
libtpu: 0.0.40
codegen_flags: <defaults>
</compile_context>

<pallas_src>
import jax
import jax.numpy as jnp
from jax.experimental import pallas as pl
from jax.experimental.pallas import tpu as pltpu


def _round_up(n: int, m: int) -> int:
    return ((n + m - 1) // m) * m


def decoder_kernel(x_ref, w_ref, eps_ref, gamma_ref, o_ref):
    # x_ref:     VMEM (TB, Z)   bf16 (or f32)
    # w_ref:     VMEM (Z, TX)   bf16 (or f32)  -- pre-transposed, native MXU feed
    # eps_ref:   VMEM (TB, TX)  f32            -- pre-generated N(0,1) noise
    # gamma_ref: SMEM (1,)      f32
    # o_ref:     VMEM (TB, TX)  f32
    z = jnp.dot(x_ref[...], w_ref[...], preferred_element_type=jnp.float32)
    # reparameterize in f32 so the noise scale is not rounded to bf16
    o_ref[...] = (z + eps_ref[...] * gamma_ref[0]).astype(o_ref.dtype)


def decoder_forward(x, What, gamma, key, *, use_bf16=True, tb_max=256, tx_max=512):
    """Fused z = x @ What^T + eps * gamma,  eps ~ N(0, 1).

    x:     (B, Z) float
    What:  (X, Z) float   (PyTorch nn.Linear weight layout: out x in)
    gamma: scalar / (1,) float
    key:   jax PRNG key used to draw eps (deterministic, reproducible)
    returns (B, X) float32
    """
    B, Z = x.shape
    X, Zw = What.shape
    assert Z == Zw

    # Noise drawn host/XLA-side (i.i.d. N(0,1)), streamed into the kernel.
    eps = jax.random.normal(key, (B, X), dtype=jnp.float32)

    # Tile sizes: sublane-aligned batch tile, lane-dense (>=128) output tile.
    TB = min(tb_max, _round_up(B, 8))
    TX = min(tx_max, _round_up(X, 128))
    Bp = _round_up(B, TB)
    Xp = _round_up(X, TX)

    mat_dtype = jnp.bfloat16 if use_bf16 else jnp.float32

    # Pad to clean tile multiples (zeros don't affect the matmul) and
    # pre-transpose the weight once to (Z, X).
    x_p = jnp.zeros((Bp, Z), mat_dtype).at[:B, :].set(x.astype(mat_dtype))
    w_t = jnp.zeros((Z, Xp), mat_dtype).at[:, :X].set(What.T.astype(mat_dtype))
    eps_p = jnp.zeros((Bp, Xp), jnp.float32).at[:B, :X].set(eps)
    gamma_s = jnp.asarray(gamma, dtype=jnp.float32).reshape((1,))

    grid = (Bp // TB, Xp // TX)
    itemsize = jnp.dtype(mat_dtype).itemsize
    cost = pl.CostEstimate(
        flops=2 * Bp * Xp * Z,
        transcendentals=0,
        bytes_accessed=(Bp * Z + Z * Xp) * itemsize + 2 * Bp * Xp * 4,
    )

    out = pl.pallas_call(
        decoder_kernel,
        out_shape=jax.ShapeDtypeStruct((Bp, Xp), jnp.float32),
        grid=grid,
        in_specs=[
            pl.BlockSpec((TB, Z), lambda i, j: (i, 0)),            # x tile
            pl.BlockSpec((Z, TX), lambda i, j: (0, j)),            # W^T tile
            pl.BlockSpec((TB, TX), lambda i, j: (i, j)),           # eps tile
            pl.BlockSpec(memory_space=pltpu.MemorySpace.SMEM),     # gamma
        ],
        out_specs=pl.BlockSpec((TB, TX), lambda i, j: (i, j)),
        compiler_params=pltpu.CompilerParams(
            dimension_semantics=("parallel", "parallel"),
        ),
        cost_estimate=cost,
    )(x_p, w_t, eps_p, gamma_s)

    return out[:B, :X]


if __name__ == "__main__":
    # Small shapes consistent with the module: z_dim -> x_dim linear map.
    batch, z_dim, x_dim = 8, 32, 128

    key = jax.random.PRNGKey(0)
    k_x, k_w, k_eps = jax.random.split(key, 3)

    x = jax.random.normal(k_x, (batch, z_dim), dtype=jnp.float32)
    What = jax.random.normal(k_w, (x_dim, z_dim), dtype=jnp.float32) * 0.1
    gamma = jnp.array([0.05], dtype=jnp.float32)

    z = decoder_forward(x, What, gamma, k_eps)
    jax.block_until_ready(z)

    assert z.shape == (batch, x_dim)
    assert bool(jnp.all(jnp.isfinite(z)))

    # Correctness: subtract the (deterministically reproducible) noise and
    # compare the linear part against plain JAX; remaining error is the bf16
    # operand rounding of the matmul.
    eps_check = jax.random.normal(k_eps, (batch, x_dim), dtype=jnp.float32)
    z_det = z - eps_check * gamma[0]
    z_ref = x @ What.T
    assert float(jnp.max(jnp.abs(z_det - z_ref))) < 1e-1

    print("KERNEL_OK")
</pallas_src>

<mosaic_0001>
module attributes {stable_mosaic.version = 11 : i64} {
  func.func @decoder_kernel(%arg0: i32, %arg1: i32, %arg2: memref<8x32xbf16, #tpu.memory_space<vmem>>, %arg3: memref<32x128xbf16, #tpu.memory_space<vmem>>, %arg4: memref<8x128xf32, #tpu.memory_space<vmem>>, %arg5: memref<1xf32, #tpu.memory_space<smem>>, %arg6: memref<8x128xf32, #tpu.memory_space<vmem>>) attributes {dimension_semantics = [#tpu.dimension_semantics<parallel>, #tpu.dimension_semantics<parallel>], iteration_bounds = array<i64: 1, 1>, scalar_prefetch = 0 : i64, scratch_operands = 0 : i64, tpu.core_type = #tpu.core_type<tc>, window_params = [{transform_indices = @transform_0, window_bounds = array<i64: 8, 32>}, {transform_indices = @transform_1, window_bounds = array<i64: 32, 128>}, {transform_indices = @transform_2, window_bounds = array<i64: 8, 128>}, {transform_indices = @transform_3, window_bounds = array<i64: 1>}, {transform_indices = @transform_4, window_bounds = array<i64: 8, 128>}]} {
    %c0 = arith.constant 0 : index
    %c0_0 = arith.constant 0 : index
    %0 = vector.load %arg2[%c0, %c0_0] : memref<8x32xbf16, #tpu.memory_space<vmem>>, vector<8x32xbf16>
    %c0_1 = arith.constant 0 : index
    %c0_2 = arith.constant 0 : index
    %1 = vector.load %arg3[%c0_1, %c0_2] : memref<32x128xbf16, #tpu.memory_space<vmem>>, vector<32x128xbf16>
    %cst = arith.constant dense<0.000000e+00> : vector<8x128xf32>
    %2 = tpu.matmul %0, %1, %cst {dimension_numbers = #tpu.dot_dimension_numbers<[1], [0], [0], [1], [0, 0, 1, 1], [], []>} : vector<8x32xbf16>, vector<32x128xbf16>, vector<8x128xf32> -> vector<8x128xf32>
    %c0_3 = arith.constant 0 : index
    %c0_4 = arith.constant 0 : index
    %3 = vector.load %arg4[%c0_3, %c0_4] : memref<8x128xf32, #tpu.memory_space<vmem>>, vector<8x128xf32>
    %c0_5 = arith.constant 0 : index
    %4 = memref.load %arg5[%c0_5] : memref<1xf32, #tpu.memory_space<smem>>
    %5 = vector.broadcast %4 : f32 to vector<8x128xf32>
    %6 = arith.mulf %3, %5 : vector<8x128xf32>
    %7 = arith.addf %2, %6 : vector<8x128xf32>
    %c0_6 = arith.constant 0 : index
    %c0_7 = arith.constant 0 : index
    %8 = vector.load %arg6[%c0_6, %c0_7] : memref<8x128xf32, #tpu.memory_space<vmem>>, vector<8x128xf32>
    tpu.vector_store %arg6[%c0_6, %c0_7], %7 {strides = array<i32>} : memref<8x128xf32, #tpu.memory_space<vmem>>, vector<8x128xf32>,
    return
  }
  func.func @transform_0(%arg0: i32, %arg1: i32) -> (i32, i32) {
    %c0_i32 = arith.constant 0 : i32
    %c0_i32_0 = arith.constant 0 : i32
    return %arg0, %c0_i32 : i32, i32
  }
  func.func @transform_1(%arg0: i32, %arg1: i32) -> (i32, i32) {
    %c0_i32 = arith.constant 0 : i32
    %c0_i32_0 = arith.constant 0 : i32
    return %c0_i32, %arg1 : i32, i32
  }
  func.func @transform_2(%arg0: i32, %arg1: i32) -> (i32, i32) {
    %c0_i32 = arith.constant 0 : i32
    return %arg0, %arg1 : i32, i32
  }
  func.func @transform_3(%arg0: i32, %arg1: i32) -> i32 {
    %c0_i32 = arith.constant 0 : i32
    %c0_i32_0 = arith.constant 0 : i32
    return %c0_i32 : i32
  }
  func.func @transform_4(%arg0: i32, %arg1: i32) -> (i32, i32) {
    %c0_i32 = arith.constant 0 : i32
    return %arg0, %arg1 : i32, i32
  }
}

</mosaic_0001>

<bundles_post_ra>
// kernel: tpu_custom_call.1
= control target key start
LH: loop header
LB: loop body
LE: loop exit
PB: predicated region body
PF: predicated region fallthrough
CT: control target
= control target key end

     0   :  { %10 = vsyncpa [#allocation4], 0  ;;  %s285_s0 = inlined_call_operand.hbm [shape: bf16[8,32], index: 0, kind: input, shape index: {}]   ;;  %s286_s1 = inlined_call_operand.hbm [shape: bf16[32,128], index: 1, kind: input, shape index: {}]   ;;  %s287_s2 = inlined_call_operand.hbm [shape: f32[8,128], index: 2, kind: input, shape index: {}]   ;;  %s288_s3 = inlined_call_operand.<no memory space> [shape: f32[1], index: 3, kind: input, shape index: {}]   ;;  %s289_s4 = inlined_call_operand.hbm [shape: f32[8,128], index: 4, kind: output, shape index: {}]  }
   0x1   :  { %11 = vsyncpa [#allocation7], 0  ;;  %s28_s17 = sshll.u32 %s286_s1, 4  ;;  %s29_s17 = int_to_ptr.hbm [resolvable:$true] %s28_s17 }
   0x2   :  { %12 = vsyncpa [#allocation5], 0  ;;  %s239_s18 = smov [#allocation6]   ;;  %s18_s22 = sshll.u32 %s285_s0, 4  ;;  %s19_s22 = int_to_ptr.hbm [resolvable:$true] %s18_s22 }
   0x3   :  { %s30_s19 = sshll.u32 %s239_s18, 4  ;;  %s240_s23 = smov 64   ;;  %s31_s19 = int_to_ptr.vmem [resolvable:$true] %s30_s19 }
   0x4   :  { %s241_s24 = smov 4   ;;  %s242_s25 = smov [#allocation3]  }
   0x5   :  { %36 = dma.hbm_to_vmem [thread:$0]  %s29_s17, 256, %s31_s19, [#allocation7], %s240_s23, %s240_s23, %s241_s24  }
   0x6   :  { %s20_s26 = sshll.u32 %s242_s25, 4  ;;  %s42_s29 = sshll.u32 %s287_s2, 4  ;;  %s21_s26 = int_to_ptr.vmem [resolvable:$true] %s20_s26  ;;  %s43_s29 = int_to_ptr.hbm [resolvable:$true] %s42_s29 }
   0x7   :  { %23 = dma.hbm_to_vmem [thread:$0]  %s19_s22, 64, %s21_s26, [#allocation4]  }
   0x8   :  { %s243_s1 = smov [#allocation8]  }
   0x9   :  { %s44_s30 = sshll.u32 %s243_s1, 4  ;;  %s45_s30 = int_to_ptr.vmem [resolvable:$true] %s44_s30 }
   0xa   :  { %47 = dma.hbm_to_vmem [thread:$0]  %s43_s29, 128, %s45_s30, [#allocation7]  }
   0xb   :  { %233 = dma.done.wait [#allocation4], 64  }
   0xc   :  { %234 = vsyncadd [#allocation4], 4294967232 }
   0xd   :  { %235 = dma.done.wait [#allocation7], 384  }
   0xe   :  { %236 = vsyncadd [#allocation7], 4294966912  ;;  %v130_v0 = vld [vmem:[#allocation6 + $0x8] sm:$0xff]  ;;  %v129_v1 = vld [vmem:[#allocation6] sm:$0xff]  ;;  %vm84_vm0 = vcmask 261120   ;;  %v70_v4 = vstv %s288_s3  ;;  %s244_s5 = smov [#allocation9]  }
   0xf   :  { %94 = vmatpush.bf16.msra.mxu0 %v130_v0  ;;  %v63_v2 = vld [vmem:[#allocation3] sm:$0xf]  ;;  %v68_v3 = vld [vmem:[#allocation8] sm:$0xff]  ;;  %s107_s6 = sshll.u32 %s244_s5, 4  ;;  %s109_s9 = sshll.u32 %s289_s4, 4  ;;  %s108_s6 = int_to_ptr.vmem [resolvable:$true] %s107_s6  ;;  %s110_s9 = int_to_ptr.hbm [resolvable:$true] %s109_s9 }
  0x10   :  { %v71_v5 = vmul.f32 %v70_v4, %v68_v3 }
  0x13   :  { %95 = vmatpush.bf16.msra.mxu0 %v129_v1 }
  0x16   :  { %128 = vmatmul.msk.bf16.vlgmr.msra.gmra.mxu0 %vm84_vm0, %v63_v2 }
  0x93   :  { %v97_v6 = vpop.f32.mrf.mxu0 }
  0x94   :  { %v98_v7 = vadd.f32 %v97_v6, %v71_v5 }
  0x96   :  { %101 = vst [vmem:[#allocation9] sm:$0xff] %v98_v7 }
  0x97   :  { %112 = dma.vmem_to_hbm [thread:$0]  %s108_s6, 128, %s110_s9, [#allocation5]  }
  0x9b   :  { %v99_v8 = vpop.f32.mrf.mxu0 }
  0x9c   :  { %237 = dma.done.wait [#allocation5], 128  }
  0x9d   :  { %238 = vsyncadd [#allocation5], 4294967168 }
  0x9e   :  { %117 = vsyncpa [#allocation4], 1 }
  0x9f   :  { %118 = vsyncpa [#allocation7], 1 }
  0xa0   :  { %119 = vsyncpa [#allocation5], 1 }

</bundles_post_ra>
